<compile_context>
chip_gen: v7x
topology: tpu7x:2x2x1
jax: 0.10.0
libtpu: 0.0.40
codegen_flags: <defaults>
</compile_context>

<pallas_src>
import functools

import jax
import jax.numpy as jnp
from jax.experimental import pallas as pl
from jax.experimental.pallas import tpu as pltpu


LANE = 128      # lane width: all feature dims padded to a multiple of this
SUBLANE = 16    # batch-tile rounding (covers f32 (8) and bf16 (16) sublane packing)


def _round_up(x, m):
    return (x + m - 1) // m * m


def _pad2d(a, rows, cols):
    r, c = a.shape
    if r == rows and c == cols:
        return a
    return jnp.pad(a, ((0, rows - r), (0, cols - c)))


# ---------------------------------------------------------------------------
# Hardware introspection (generation-aware budgets / tiles)
# ---------------------------------------------------------------------------
@functools.lru_cache(maxsize=1)
def _tpu_config():
    vmem = 64 * 2**20              # conservative default (v7x-sized)
    try:
        vmem = int(pltpu.get_tpu_info().vmem_capacity_bytes)
    except Exception:
        pass
    kind = ""
    try:
        kind = jax.devices()[0].device_kind.lower()
    except Exception:
        pass
    is_v7 = "v7" in kind
    if not kind:                   # unknown chip: infer from VMEM size
        is_v7 = vmem <= (64 << 20)
    is_v5e = any(t in kind for t in ("v5e", "v5 lite", "v5lite"))
    return {
        "vmem_bytes": vmem,
        "two_tc": is_v7,           # v7x: 2 TensorCores share the chip
        "big_mxu": not is_v5e,     # v6e/v7x: 256-wide MXU
        "is_v5e": is_v5e,
    }


@functools.lru_cache(maxsize=1)
def _single_buffer_supported():
    """Probe once whether pipeline_mode=pl.Buffered(1) lowers on this build."""
    try:
        def k(x_ref, o_ref):
            o_ref[...] = x_ref[...]
        x = jnp.zeros((8, 128), jnp.float32)
        out = pl.pallas_call(
            k,
            out_shape=jax.ShapeDtypeStruct((8, 128), jnp.float32),
            grid=(1,),
            in_specs=[pl.BlockSpec((8, 128), lambda i: (0, 0),
                                   pipeline_mode=pl.Buffered(1))],
            out_specs=pl.BlockSpec((8, 128), lambda i: (0, 0)),
        )(x)
        jax.block_until_ready(out)
        return True
    except Exception:
        return False


def _resident_spec(shape, single_buffer):
    """BlockSpec for a grid-invariant (VMEM-resident) operand."""
    if single_buffer:
        return pl.BlockSpec(shape, lambda i: (0, 0), pipeline_mode=pl.Buffered(1))
    return pl.BlockSpec(shape, lambda i: (0, 0))


def _feat_align(d, cfg):
    """Padded feature dim: 256-aligned on big-MXU chips (tiled path), else 128."""
    if cfg["big_mxu"] and d >= 256:
        return _round_up(d, 256)
    return _round_up(d, LANE)


def _choose_tm(M, *, cfg, max_width):
    """Generation-aware batch tile."""
    big_vmem = cfg["vmem_bytes"] >= (96 << 20)
    if cfg["two_tc"]:
        # v7x: keep f32 epilogue temps small for wide layers; 64 MiB VMEM.
        cap = 128 if max_width >= 2048 else (256 if M >= 512 else 128)
    elif big_vmem:
        # single-TC, 128 MiB VMEM: amortize per-step overhead with big tiles.
        cap = 512 if M >= 2048 else (256 if M >= 512 else 128)
    else:
        cap = 256 if M >= 1024 else 128
    tm = min(cap, _round_up(M, SUBLANE))
    tm = _round_up(tm, SUBLANE)
    if cfg["two_tc"]:
        # prefer an even number of grid steps so both TensorCores stay busy
        steps = -(-M // tm)
        if steps > 1 and steps % 2 == 1:
            tm = _round_up(-(-M // (steps + 1)), SUBLANE)
    return max(tm, SUBLANE)


def _shrink_tm_for_vmem(tm, pdims, resident_w_bytes, itemsize, vmem_bytes):
    """Shrink the batch tile until the fused-kernel footprint fits VMEM."""
    budget = int(0.80 * vmem_bytes)
    while True:
        fp = (resident_w_bytes
              + 2 * tm * pdims[0] * itemsize      # double-buffered x tile
              + 2 * tm * pdims[-1] * 4            # double-buffered f32 out tile
              + 4 * tm * max(pdims) * 4)          # f32 activation temps
        if fp <= budget or tm <= SUBLANE:
            return tm
        tm = max(SUBLANE, _round_up(tm // 2, SUBLANE))


# ---------------------------------------------------------------------------
# Fused whole-MLP kernel (weights VMEM-resident, grid over batch tiles only)
# ---------------------------------------------------------------------------
def _fused_mlp_kernel(*refs, n_layers, activation, compute_dtype, low_prec_act):
    # refs = (x_ref, w0, b0, w1, b1, ..., wc, bc, o_ref)
    x_ref = refs[0]
    o_ref = refs[-1]
    h = x_ref[...]                                     # compute dtype (bf16 or f32)
    for li in range(n_layers):
        w_ref = refs[1 + 2 * li]
        b_ref = refs[2 + 2 * li]
        acc = jnp.dot(h, w_ref[...], preferred_element_type=jnp.float32)
        acc = acc + b_ref[...]                         # (1, N) f32 bias broadcast
        if li < n_layers - 1:
            if activation == "relu":
                h = jnp.maximum(acc, 0.0).astype(compute_dtype)   # VPU
            elif low_prec_act:
                h = jnp.tanh(acc.astype(compute_dtype))           # bf16 EUP (v6e/v7x)
            else:
                h = jnp.tanh(acc).astype(compute_dtype)           # f32 EUP (v5e / f32)
        else:
            o_ref[...] = acc.astype(o_ref.dtype)


# ---------------------------------------------------------------------------
# Per-layer (M, N, K)-tiled linear with f32 VMEM accumulator (width-agnostic)
# ---------------------------------------------------------------------------
def _linear_tiled_kernel(x_ref, w_ref, b_ref, o_ref, acc_ref, *, act):
    @pl.when(pl.program_id(2) == 0)
    def _():
        acc_ref[...] = jnp.zeros_like(acc_ref)

    acc_ref[...] += jnp.dot(x_ref[...], w_ref[...],
                            preferred_element_type=jnp.float32)

    @pl.when(pl.program_id(2) == pl.num_programs(2) - 1)
    def _():
        r = acc_ref[...] + b_ref[...]          # f32 epilogue
        if act == "relu":
            r = jnp.maximum(r, 0.0)
        elif act == "tanh":
            r = jnp.tanh(r)
        o_ref[...] = r.astype(o_ref.dtype)


def _choose_tile(dim_padded, prefer=512):
    if dim_padded <= prefer:
        return dim_padded
    for cand in (prefer, 512, 256, 128):
        if dim_padded % cand == 0:
            return cand
    return 128


def _linear_tiled_padded(xp, wp, bp, *, act, out_dtype, tm, cfg):
    """y = act(xp @ wp + bp) on already-padded operands; returns padded output."""
    Mp, Kp = xp.shape
    _, Np = wp.shape
    itemsize = xp.dtype.itemsize
    out_itemsize = jnp.dtype(out_dtype).itemsize

    tk = _choose_tile(Kp, prefer=512)
    tn = _choose_tile(Np, prefer=512)    # large tn: fewer re-reads of the x row block
    grid_m, grid_n, grid_k = Mp // tm, Np // tn, Kp // tk

    est = (2 * (tm * tk + tk * tn) * itemsize + 2 * tm * tn * out_itemsize
           + tm * tn * 4 + 2 * tn * 4)
    cap = max(cfg["vmem_bytes"] - (8 << 20), 32 << 20)
    vmem_limit = int(min(max(2 * est, 32 << 20), cap))

    bytes_accessed = (Mp * Kp * itemsize * grid_n        # x re-read per N tile
                      + Kp * Np * itemsize * grid_m      # w re-read per M tile
                      + Mp * Np * out_itemsize + Np * 4)

    kernel = functools.partial(_linear_tiled_kernel, act=act)
    return pl.pallas_call(
        kernel,
        out_shape=jax.ShapeDtypeStruct((Mp, Np), out_dtype),
        grid_spec=pltpu.PrefetchScalarGridSpec(
            num_scalar_prefetch=0,
            grid=(grid_m, grid_n, grid_k),
            in_specs=[
                pl.BlockSpec((tm, tk), lambda i, j, k: (i, k)),   # x tile
                pl.BlockSpec((tk, tn), lambda i, j, k: (k, j)),   # weight tile
                pl.BlockSpec((1, tn), lambda i, j, k: (0, j)),    # bias tile
            ],
            out_specs=pl.BlockSpec((tm, tn), lambda i, j, k: (i, j)),
            scratch_shapes=[pltpu.VMEM((tm, tn), jnp.float32)],
        ),
        compiler_params=pltpu.CompilerParams(
            dimension_semantics=("parallel", "parallel", "arbitrary"),
            vmem_limit_bytes=vmem_limit,
        ),
        cost_estimate=pl.CostEstimate(
            flops=int(2 * Mp * Np * Kp),
            transcendentals=int(Mp * Np) if act == "tanh" else 0,
            bytes_accessed=int(bytes_accessed)),
    )(xp, wp, bp)


# ---------------------------------------------------------------------------
# Forward-pass builder (weight prep hoisted out of the per-call path)
# ---------------------------------------------------------------------------
def make_mlp_forward(hidden_params, classifier_params, input_dim, *,
                     activation="relu", compute_dtype=jnp.bfloat16, mode="auto"):
    """Returns forward(x) matching the PyTorch MLP module semantics.

    Weights are padded/cast ONCE here; the returned (jitted) forward only
    pads/casts the input and runs the Pallas kernel(s).
    """
    if activation not in ("relu", "tanh"):
        raise ValueError(f"unsupported activation: {activation!r}")

    weights = [w for w, _ in hidden_params] + [classifier_params[0]]
    biases = [b for _, b in hidden_params] + [classifier_params[1]]
    n_layers = len(weights)
    dims = [int(weights[0].shape[0])] + [int(w.shape[1]) for w in weights]
    if dims[0] != input_dim:
        raise ValueError("first layer input dim does not match input_dim")
    for li, w in enumerate(weights):
        if int(w.shape[0]) != dims[li]:
            raise ValueError("layer dim chain mismatch")

    cfg = _tpu_config()
    itemsize = jnp.dtype(compute_dtype).itemsize
    single_buf = _single_buffer_supported()
    buf_mult = 1 if single_buf else 2
    low_prec_act = (activation == "tanh" and compute_dtype == jnp.bfloat16
                    and not cfg["is_v5e"])

    # ---- fused vs tiled decision against this generation's real VMEM ----
    pdims128 = [_round_up(d, LANE) for d in dims]
    w_bytes128 = (sum(pdims128[i] * pdims128[i + 1] * itemsize for i in range(n_layers))
                  + sum(pdims128[i + 1] * 4 for i in range(n_layers)))
    if mode == "auto":
        mode = "fused" if buf_mult * w_bytes128 <= int(0.65 * cfg["vmem_bytes"]) \
            else "tiled"

    # ---- hoisted weight prep: pad + cast exactly once ----
    if mode == "fused":
        pdims = pdims128
    else:
        pdims = [_feat_align(d, cfg) for d in dims]
    wps, bps = [], []
    for li, (w, b) in enumerate(zip(weights, biases)):
        wps.append(_pad2d(jnp.asarray(w, jnp.float32),
                          pdims[li], pdims[li + 1]).astype(compute_dtype))
        bps.append(_pad2d(jnp.asarray(b, jnp.float32).reshape(1, -1),
                          1, pdims[li + 1]))
    w_bytes = (sum(int(w.size) * w.dtype.itemsize for w in wps)
               + sum(int(b.size) * 4 for b in bps))

    # ------------------------- fused path -------------------------
    @jax.jit
    def _fused_jit(x2d, *wb):
        wref = wb[:n_layers]
        bref = wb[n_layers:]
        M = x2d.shape[0]
        tm = _choose_tm(M, cfg=cfg, max_width=max(pdims))
        tm = _shrink_tm_for_vmem(tm, pdims, buf_mult * w_bytes, itemsize,
                                 cfg["vmem_bytes"])
        Mp = _round_up(M, tm)
        xp = _pad2d(x2d.astype(compute_dtype), Mp, pdims[0])   # single cast of x

        flat_args = [xp]
        in_specs = [pl.BlockSpec((tm, pdims[0]), lambda i: (i, 0))]
        for li in range(n_layers):
            flat_args += [wref[li], bref[li]]
            in_specs.append(_resident_spec((pdims[li], pdims[li + 1]), single_buf))
            in_specs.append(_resident_spec((1, pdims[li + 1]), single_buf))
        out_spec = pl.BlockSpec((tm, pdims[-1]), lambda i: (i, 0))

        flops = 2 * Mp * sum(pdims[i] * pdims[i + 1] for i in range(n_layers))
        transc = Mp * sum(pdims[1:-1]) if activation == "tanh" else 0
        bytes_accessed = int(xp.size) * itemsize + w_bytes + Mp * pdims[-1] * 4

        est = (buf_mult * w_bytes + 2 * tm * pdims[0] * itemsize
               + 2 * tm * pdims[-1] * 4 + 4 * tm * max(pdims) * 4)
        cap = max(cfg["vmem_bytes"] - (8 << 20), 32 << 20)
        vmem_limit = int(min(max(est * 5 // 4 + (4 << 20), 32 << 20), cap))

        kernel = functools.partial(
            _fused_mlp_kernel, n_layers=n_layers, activation=activation,
            compute_dtype=compute_dtype, low_prec_act=low_prec_act)
        out = pl.pallas_call(
            kernel,
            out_shape=jax.ShapeDtypeStruct((Mp, pdims[-1]), jnp.float32),
            grid_spec=pltpu.PrefetchScalarGridSpec(
                num_scalar_prefetch=0,
                grid=(Mp // tm,),
                in_specs=in_specs,
                out_specs=out_spec,
            ),
            compiler_params=pltpu.CompilerParams(
                dimension_semantics=("parallel",),
                vmem_limit_bytes=vmem_limit,
            ),
            cost_estimate=pl.CostEstimate(
                flops=int(flops), transcendentals=int(transc),
                bytes_accessed=int(bytes_accessed)),
        )(*flat_args)
        return out[:M, :dims[-1]]

    # ------------------------- tiled path -------------------------
    @jax.jit
    def _tiled_jit(x2d, *wb):
        wref = wb[:n_layers]
        bref = wb[n_layers:]
        M = x2d.shape[0]
        tm = _choose_tm(M, cfg=cfg, max_width=max(pdims))
        Mp = _round_up(M, tm)
        # Intermediate activations stay padded and in compute_dtype between
        # layers (no per-layer f32 round trip / slice / re-pad).
        h = _pad2d(x2d.astype(compute_dtype), Mp, pdims[0])
        for li in range(n_layers):
            last = li == n_layers - 1
            h = _linear_tiled_padded(
                h, wref[li], bref[li],
                act=("none" if last else activation),
                out_dtype=(jnp.float32 if last else compute_dtype),
                tm=tm, cfg=cfg)
        return h[:M, :dims[-1]]

    jit_fn = _fused_jit if mode == "fused" else _tiled_jit

    def forward(x):
        x2d = x.reshape(-1, input_dim)
        return jit_fn(x2d, *wps, *bps)

    return forward


# ---------------------------------------------------------------------------
# Parameter init + pure-JAX reference
# ---------------------------------------------------------------------------
def init_mlp_params(key, input_dim, output_dim, width, depth):
    """Deterministic synthetic parameters (shapes match nn.Linear layers)."""
    params = []
    hin = input_dim
    for _ in range(depth):
        key, kw, kb = jax.random.split(key, 3)
        bound = 1.0 / jnp.sqrt(hin)
        w = jax.random.uniform(kw, (hin, width), jnp.float32, -bound, bound)
        b = jax.random.uniform(kb, (width,), jnp.float32, -bound, bound)
        params.append((w, b))
        hin = width
    key, kw, kb = jax.random.split(key, 3)
    bound = 1.0 / jnp.sqrt(width)
    wc = jax.random.uniform(kw, (width, output_dim), jnp.float32, -bound, bound)
    bc = jax.random.uniform(kb, (output_dim,), jnp.float32, -bound, bound)
    return params, (wc, bc)


def mlp_reference(x, hidden_params, classifier_params, input_dim, activation="relu"):
    h = x.reshape(-1, input_dim).astype(jnp.float32)
    act = jnp.tanh if activation == "tanh" else (lambda v: jnp.maximum(v, 0.0))
    for w, b in hidden_params:
        h = act(h @ w + b)
    wc, bc = classifier_params
    return h @ wc + bc


if __name__ == "__main__":
    # Small shapes consistent with the module (depth = 2 hidden layers).
    batch, input_dim, width, output_dim, depth = 16, 32, 128, 16, 2

    key = jax.random.PRNGKey(0)
    key, kx = jax.random.split(key)
    x = jax.random.normal(kx, (batch, input_dim), jnp.float32)
    hidden_params, classifier_params = init_mlp_params(
        key, input_dim, output_dim, width, depth)

    ref = mlp_reference(x, hidden_params, classifier_params, input_dim, "relu")

    # 1) Fused kernel, bf16 MXU inputs / f32 accumulate (default fast path).
    fwd_bf16 = make_mlp_forward(hidden_params, classifier_params, input_dim,
                                activation="relu")
    out_bf16 = jax.block_until_ready(fwd_bf16(x))
    assert out_bf16.shape == (batch, output_dim)
    assert jnp.allclose(out_bf16, ref, atol=2e-2, rtol=2e-2), "bf16 fused mismatch"

    # 2) Fused kernel, full f32 compute (tight correctness check of the kernel).
    fwd_f32 = make_mlp_forward(hidden_params, classifier_params, input_dim,
                               activation="relu", compute_dtype=jnp.float32)
    out_f32 = jax.block_until_ready(fwd_f32(x))
    assert jnp.allclose(out_f32, ref, atol=1e-4, rtol=1e-4), "f32 fused mismatch"

    # 3) tanh activation through the fused kernel (EUP).
    ref_tanh = mlp_reference(x, hidden_params, classifier_params, input_dim, "tanh")
    fwd_tanh = make_mlp_forward(hidden_params, classifier_params, input_dim,
                                activation="tanh", compute_dtype=jnp.float32)
    out_tanh = jax.block_until_ready(fwd_tanh(x))
    assert jnp.allclose(out_tanh, ref_tanh, atol=1e-4, rtol=1e-4), "tanh fused mismatch"

    # 4) Width-agnostic tiled fallback (K/N grid + f32 accumulator), forced.
    b2, in2, w2, out2, d2 = 256, 200, 384, 24, 2
    key, kx2 = jax.random.split(key)
    x2 = jax.random.normal(kx2, (b2, in2), jnp.float32)
    hp2, cp2 = init_mlp_params(key, in2, out2, w2, d2)
    fwd_tiled = make_mlp_forward(hp2, cp2, in2, activation="relu",
                                 compute_dtype=jnp.float32, mode="tiled")
    got = jax.block_until_ready(fwd_tiled(x2))
    ref2 = mlp_reference(x2, hp2, cp2, in2, "relu")
    assert got.shape == (b2, out2)
    assert jnp.allclose(got, ref2, atol=1e-4, rtol=1e-4), "tiled mismatch"

    print("KERNEL_OK")
</pallas_src>

<mosaic_0001>
module attributes {stable_mosaic.version = 11 : i64} {
  func.func @k(%arg0: i32, %arg1: memref<8x128xf32, #tpu.memory_space<vmem>>, %arg2: memref<8x128xf32, #tpu.memory_space<vmem>>) attributes {dimension_semantics = [#tpu.dimension_semantics<arbitrary>], iteration_bounds = array<i64: 1>, scalar_prefetch = 0 : i64, scratch_operands = 0 : i64, tpu.core_type = #tpu.core_type<tc>, window_params = [{pipeline_mode = #tpu.pipeline_mode<synchronous>, transform_indices = @transform_0, window_bounds = array<i64: 8, 128>}, {pipeline_mode = #tpu.pipeline_mode<synchronous>, transform_indices = @transform_1, window_bounds = array<i64: 8, 128>}]} {
    %c0 = arith.constant 0 : index
    %c0_0 = arith.constant 0 : index
    %0 = vector.load %arg1[%c0, %c0_0] : memref<8x128xf32, #tpu.memory_space<vmem>>, vector<8x128xf32>
    %c0_1 = arith.constant 0 : index
    %c0_2 = arith.constant 0 : index
    %1 = vector.load %arg2[%c0_1, %c0_2] : memref<8x128xf32, #tpu.memory_space<vmem>>, vector<8x128xf32>
    tpu.vector_store %arg2[%c0_1, %c0_2], %0 {strides = array<i32>} : memref<8x128xf32, #tpu.memory_space<vmem>>, vector<8x128xf32>,
    return
  }
  func.func @transform_0(%arg0: i32) -> (i32, i32) {
    %c0_i32 = arith.constant 0 : i32
    %c0_i32_0 = arith.constant 0 : i32
    %c0_i32_1 = arith.constant 0 : i32
    return %c0_i32, %c0_i32_0 : i32, i32
  }
  func.func @transform_1(%arg0: i32) -> (i32, i32) {
    %c0_i32 = arith.constant 0 : i32
    %c0_i32_0 = arith.constant 0 : i32
    %c0_i32_1 = arith.constant 0 : i32
    return %c0_i32, %c0_i32_0 : i32, i32
  }
}

module attributes {stable_mosaic.version = 11 : i64} {
  func.func @_fused_mlp_kernel(%arg0: i32, %arg1: memref<16x128xbf16, #tpu.memory_space<vmem>>, %arg2: memref<128x128xbf16, #tpu.memory_space<vmem>>, %arg3: memref<1x128xf32, #tpu.memory_space<vmem>>, %arg4: memref<128x128xbf16, #tpu.memory_space<vmem>>, %arg5: memref<1x128xf32, #tpu.memory_space<vmem>>, %arg6: memref<128x128xbf16, #tpu.memory_space<vmem>>, %arg7: memref<1x128xf32, #tpu.memory_space<vmem>>, %arg8: memref<16x128xf32, #tpu.memory_space<vmem>>) attributes {dimension_semantics = [#tpu.dimension_semantics<parallel>], iteration_bounds = array<i64: 1>, scalar_prefetch = 0 : i64, scratch_operands = 0 : i64, tpu.core_type = #tpu.core_type<tc>, window_params = [{transform_indices = @transform_0, window_bounds = array<i64: 16, 128>}, {pipeline_mode = #tpu.pipeline_mode<synchronous>, transform_indices = @transform_1, window_bounds = array<i64: 128, 128>}, {pipeline_mode = #tpu.pipeline_mode<synchronous>, transform_indices = @transform_2, window_bounds = array<i64: 1, 128>}, {pipeline_mode = #tpu.pipeline_mode<synchronous>, transform_indices = @transform_3, window_bounds = array<i64: 128, 128>}, {pipeline_mode = #tpu.pipeline_mode<synchronous>, transform_indices = @transform_4, window_bounds = array<i64: 1, 128>}, {pipeline_mode = #tpu.pipeline_mode<synchronous>, transform_indices = @transform_5, window_bounds = array<i64: 128, 128>}, {pipeline_mode = #tpu.pipeline_mode<synchronous>, transform_indices = @transform_6, window_bounds = array<i64: 1, 128>}, {transform_indices = @transform_7, window_bounds = array<i64: 16, 128>}]} {
    %c0 = arith.constant 0 : index
    %c0_0 = arith.constant 0 : index
    %0 = vector.load %arg1[%c0, %c0_0] : memref<16x128xbf16, #tpu.memory_space<vmem>>, vector<16x128xbf16>
    %c0_1 = arith.constant 0 : index
    %c0_2 = arith.constant 0 : index
    %1 = vector.load %arg2[%c0_1, %c0_2] : memref<128x128xbf16, #tpu.memory_space<vmem>>, vector<128x128xbf16>
    %cst = arith.constant dense<0.000000e+00> : vector<16x128xf32>
    %2 = tpu.matmul %0, %1, %cst {dimension_numbers = #tpu.dot_dimension_numbers<[1], [0], [0], [1], [0, 0, 1, 1], [], []>} : vector<16x128xbf16>, vector<128x128xbf16>, vector<16x128xf32> -> vector<16x128xf32>
    %c0_3 = arith.constant 0 : index
    %c0_4 = arith.constant 0 : index
    %3 = vector.load %arg3[%c0_3, %c0_4] : memref<1x128xf32, #tpu.memory_space<vmem>>, vector<1x128xf32>
    %4 = vector.broadcast %3 : vector<1x128xf32> to vector<16x128xf32>
    %5 = arith.addf %2, %4 : vector<16x128xf32>
    %cst_5 = arith.constant 0.000000e+00 : f32
    %6 = vector.broadcast %cst_5 : f32 to vector<16x128xf32>
    %7 = arith.maximumf %5, %6 : vector<16x128xf32>
    %8 = arith.truncf %7 : vector<16x128xf32> to vector<16x128xbf16>
    %c0_6 = arith.constant 0 : index
    %c0_7 = arith.constant 0 : index
    %9 = vector.load %arg4[%c0_6, %c0_7] : memref<128x128xbf16, #tpu.memory_space<vmem>>, vector<128x128xbf16>
    %cst_8 = arith.constant dense<0.000000e+00> : vector<16x128xf32>
    %10 = tpu.matmul %8, %9, %cst_8 {dimension_numbers = #tpu.dot_dimension_numbers<[1], [0], [0], [1], [0, 0, 1, 1], [], []>} : vector<16x128xbf16>, vector<128x128xbf16>, vector<16x128xf32> -> vector<16x128xf32>
    %c0_9 = arith.constant 0 : index
    %c0_10 = arith.constant 0 : index
    %11 = vector.load %arg5[%c0_9, %c0_10] : memref<1x128xf32, #tpu.memory_space<vmem>>, vector<1x128xf32>
    %12 = vector.broadcast %11 : vector<1x128xf32> to vector<16x128xf32>
    %13 = arith.addf %10, %12 : vector<16x128xf32>
    %cst_11 = arith.constant 0.000000e+00 : f32
    %14 = vector.broadcast %cst_11 : f32 to vector<16x128xf32>
    %15 = arith.maximumf %13, %14 : vector<16x128xf32>
    %16 = arith.truncf %15 : vector<16x128xf32> to vector<16x128xbf16>
    %c0_12 = arith.constant 0 : index
    %c0_13 = arith.constant 0 : index
    %17 = vector.load %arg6[%c0_12, %c0_13] : memref<128x128xbf16, #tpu.memory_space<vmem>>, vector<128x128xbf16>
    %cst_14 = arith.constant dense<0.000000e+00> : vector<16x128xf32>
    %18 = tpu.matmul %16, %17, %cst_14 {dimension_numbers = #tpu.dot_dimension_numbers<[1], [0], [0], [1], [0, 0, 1, 1], [], []>} : vector<16x128xbf16>, vector<128x128xbf16>, vector<16x128xf32> -> vector<16x128xf32>
    %c0_15 = arith.constant 0 : index
    %c0_16 = arith.constant 0 : index
    %19 = vector.load %arg7[%c0_15, %c0_16] : memref<1x128xf32, #tpu.memory_space<vmem>>, vector<1x128xf32>
    %20 = vector.broadcast %19 : vector<1x128xf32> to vector<16x128xf32>
    %21 = arith.addf %18, %20 : vector<16x128xf32>
    %c0_17 = arith.constant 0 : index
    %c0_18 = arith.constant 0 : index
    %22 = vector.load %arg8[%c0_17, %c0_18] : memref<16x128xf32, #tpu.memory_space<vmem>>, vector<16x128xf32>
    tpu.vector_store %arg8[%c0_17, %c0_18], %21 {strides = array<i32>} : memref<16x128xf32, #tpu.memory_space<vmem>>, vector<16x128xf32>,
    return
  }
  func.func @transform_0(%arg0: i32) -> (i32, i32) {
    %c0_i32 = arith.constant 0 : i32
    %c0_i32_0 = arith.constant 0 : i32
    return %arg0, %c0_i32 : i32, i32
  }
  func.func @transform_1(%arg0: i32) -> (i32, i32) {
    %c0_i32 = arith.constant 0 : i32
    %c0_i32_0 = arith.constant 0 : i32
    %c0_i32_1 = arith.constant 0 : i32
    return %c0_i32, %c0_i32_0 : i32, i32
  }
  func.func @transform_2(%arg0: i32) -> (i32, i32) {
    %c0_i32 = arith.constant 0 : i32
    %c0_i32_0 = arith.constant 0 : i32
    %c0_i32_1 = arith.constant 0 : i32
    return %c0_i32, %c0_i32_0 : i32, i32
  }
  func.func @transform_3(%arg0: i32) -> (i32, i32) {
    %c0_i32 = arith.constant 0 : i32
    %c0_i32_0 = arith.constant 0 : i32
    %c0_i32_1 = arith.constant 0 : i32
    return %c0_i32, %c0_i32_0 : i32, i32
  }
  func.func @transform_4(%arg0: i32) -> (i32, i32) {
    %c0_i32 = arith.constant 0 : i32
    %c0_i32_0 = arith.constant 0 : i32
    %c0_i32_1 = arith.constant 0 : i32
    return %c0_i32, %c0_i32_0 : i32, i32
  }
  func.func @transform_5(%arg0: i32) -> (i32, i32) {
    %c0_i32 = arith.constant 0 : i32
    %c0_i32_0 = arith.constant 0 : i32
    %c0_i32_1 = arith.constant 0 : i32
    return %c0_i32, %c0_i32_0 : i32, i32
  }
  func.func @transform_6(%arg0: i32) -> (i32, i32) {
    %c0_i32 = arith.constant 0 : i32
    %c0_i32_0 = arith.constant 0 : i32
    %c0_i32_1 = arith.constant 0 : i32
    return %c0_i32, %c0_i32_0 : i32, i32
  }
  func.func @transform_7(%arg0: i32) -> (i32, i32) {
    %c0_i32 = arith.constant 0 : i32
    %c0_i32_0 = arith.constant 0 : i32
    return %arg0, %c0_i32 : i32, i32
  }
}

</mosaic_0001>

<bundles_post_ra>
// kernel: tpu_custom_call.1
= control target key start
LH: loop header
LB: loop body
LE: loop exit
PB: predicated region body
PF: predicated region fallthrough
CT: control target
= control target key end

     0   :  { %6 = vsyncpa [#allocation3], 0  ;;  %s124_s0 = inlined_call_operand.hbm [shape: f32[8,128], index: 0, kind: input, shape index: {}]   ;;  %s125_s1 = inlined_call_operand.hbm [shape: f32[8,128], index: 1, kind: output, shape index: {}]  }
   0x1   :  { %7 = vsyncpa [#allocation4], 0  ;;  %s88_s6 = smov [#allocation2]   ;;  %s40_s10 = scalar_lea.hbm %s124_s0, 128 }
   0x2   :  { %s14_s7 = sshll.u32 %s88_s6, 4  ;;  %p41_p0 = scmp.ne.s32.totalorder %s124_s0, %s40_s10  ;;  %s15_s7 = int_to_ptr.vmem [resolvable:$true] %s14_s7 }
   0x3   :  { %p44_p1 = scmp.lt.u32.totalorder %s40_s10, %s124_s0 }
   0x5   :  { %p46_p2 = pnand %p44_p1, %p41_p0 }
   0x7   :  { %49 = shalt.err (!%p46_p2)
}
   0x8   :  { %s50_s15 = scalar_lea.vmem %s15_s7, 128  ;;  %p55_p4 = scmp.lt.s32.totalorder %s15_s7, %s15_s7 }
   0x9   :  { %p51_p3 = scmp.ne.s32.totalorder %s15_s7, %s50_s15  ;;  %p56_p5 = scmp.lt.s32.totalorder %s50_s15, %s50_s15 }
   0xb   :  { %p57_p6 = por %p56_p5, %p55_p4 }
   0xd   :  { %p58_p7 = pnand %p57_p6, %p51_p3 }
   0xf   :  { %61 = shalt.err (!%p58_p7)
}
  0x10   :  { %17 = dma.hbm_to_vmem [thread:$0]  %s124_s0, 128, %s15_s7, [#allocation3]  }
  0x11   :  { %84 = dma.done.wait [#allocation3], 128  }
  0x12   :  { %85 = vsyncadd [#allocation3], 4294967168  ;;  %s89_s18 = smov [#allocation5]   ;;  %v21_v0 = vld [vmem:[#allocation2] sm:$0xff] }
  0x13   :  { %s29_s19 = sshll.u32 %s89_s18, 4  ;;  %22 = vst [vmem:[#allocation5] sm:$0xff] %v21_v0  ;;  %s30_s19 = int_to_ptr.vmem [resolvable:$true] %s29_s19 }
  0x14   :  { %s62_s20 = scalar_lea.vmem %s30_s19, 128  ;;  %p67_p9 = scmp.lt.s32.totalorder %s30_s19, %s30_s19 }
  0x15   :  { %p63_p8 = scmp.ne.s32.totalorder %s30_s19, %s62_s20  ;;  %p68_p10 = scmp.lt.s32.totalorder %s62_s20, %s62_s20 }
  0x17   :  { %p69_p11 = por %p68_p10, %p67_p9 }
  0x19   :  { %p70_p12 = pnand %p69_p11, %p63_p8 }
  0x1b   :  { %73 = shalt.err (!%p70_p12)
}
  0x1c   :  { %s74_s23 = scalar_lea.hbm %s125_s1, 128 }
  0x1d   :  { %p75_p13 = scmp.ne.s32.totalorder %s125_s1, %s74_s23  ;;  %p78_p0 = scmp.lt.u32.totalorder %s74_s23, %s125_s1 }
  0x1f   :  { %p80_p1 = pnand %p78_p0, %p75_p13 }
  0x21   :  { %83 = shalt.err (!%p80_p1)
}
  0x22   :  { %32 = dma.vmem_to_hbm [thread:$0]  %s30_s19, 128, %s125_s1, [#allocation4]  }
  0x23   :  { %86 = dma.done.wait [#allocation4], 128  }
  0x24   :  { %87 = vsyncadd [#allocation4], 4294967168 }
  0x25   :  { %36 = vsyncpa [#allocation3], 1 }
  0x26   :  { %37 = vsyncpa [#allocation4], 1 }

// kernel: _fused_jit.1
= control target key start
LH: loop header
LB: loop body
LE: loop exit
PB: predicated region body
PF: predicated region fallthrough
CT: control target
= control target key end

     0   :  { %12 = vsyncpa [#allocation3], 0  ;;  %s839_s0 = inlined_call_operand.vmem [shape: bf16[16,128], index: 0, kind: input, shape index: {}]   ;;  %s840_s1 = inlined_call_operand.hbm [shape: bf16[128,128], index: 1, kind: input, shape index: {}]   ;;  %s841_s2 = inlined_call_operand.vmem [shape: f32[1,128], index: 2, kind: input, shape index: {}]   ;;  %s842_s3 = inlined_call_operand.hbm [shape: bf16[128,128], index: 3, kind: input, shape index: {}]   ;;  %s843_s4 = inlined_call_operand.vmem [shape: f32[1,128], index: 4, kind: input, shape index: {}]   ;;  %s844_s5 = inlined_call_operand.hbm [shape: bf16[128,128], index: 5, kind: input, shape index: {}]   ;;  %s845_s6 = inlined_call_operand.vmem [shape: f32[1,128], index: 6, kind: input, shape index: {}]   ;;  %s846_s7 = inlined_call_operand.hbm [shape: f32[16,128], index: 7, kind: output, shape index: {}]  }
   0x1   :  { %13 = vsyncpa [#allocation6], 0 }
   0x2   :  { %14 = vsyncpa [#allocation4], 0  ;;  %s683_s24 = smov [#allocation5]   ;;  %s684_s26 = smov [#allocation2]  }
   0x3   :  { %s36_s25 = sshll.u32 %s683_s24, 4  ;;  %s22_s27 = sshll.u32 %s684_s26, 4  ;;  %s37_s25 = int_to_ptr.vmem [resolvable:$true] %s36_s25  ;;  %s733_s27 = int_to_ptr.vmem [resolvable:$true] %s22_s27 }
   0x4   :  { %s589_s30 = scalar_lea.hbm %s842_s3, 1024 }
   0x5   :  { %p590_p0 = scmp.ne.s32.totalorder %s842_s3, %s589_s30  ;;  %p593_p1 = scmp.lt.u32.totalorder %s589_s30, %s842_s3 }
   0x7   :  { %p595_p2 = pnand %p593_p1, %p590_p0 }
   0x9   :  { %598 = shalt.err (!%p595_p2)
}
   0xa   :  { %s599_s12 = scalar_lea.vmem %s37_s25, 1024  ;;  %p604_p4 = scmp.lt.s32.totalorder %s37_s25, %s37_s25 }
   0xb   :  { %p600_p3 = scmp.ne.s32.totalorder %s37_s25, %s599_s12  ;;  %p605_p5 = scmp.lt.s32.totalorder %s599_s12, %s599_s12 }
   0xd   :  { %p606_p6 = por %p605_p5, %p604_p4 }
   0xf   :  { %p607_p7 = pnand %p606_p6, %p600_p3 }
  0x11   :  { %610 = shalt.err (!%p607_p7)
}
  0x12   :  { %s685_s13 = smov 64   ;;  %s686_s14 = smov 4  }
  0x13   :  { %42 = dma.hbm_to_vmem [thread:$0]  %s842_s3, 1024, %s37_s25, [#allocation6], %s685_s13, %s685_s13, %s686_s14  }
  0x14   :  { %s611_s19 = scalar_lea.hbm %s840_s1, 1024 }
  0x15   :  { %p612_p8 = scmp.ne.s32.totalorder %s840_s1, %s611_s19  ;;  %p615_p9 = scmp.lt.u32.totalorder %s611_s19, %s840_s1 }
  0x17   :  { %p617_p10 = pnand %p615_p9, %p612_p8 }
  0x19   :  { %620 = shalt.err (!%p617_p10)
}
  0x1a   :  { %s621_s24 = scalar_lea.vmem %s733_s27, 1024  ;;  %p626_p12 = scmp.lt.s32.totalorder %s733_s27, %s733_s27 }
  0x1b   :  { %p622_p11 = scmp.ne.s32.totalorder %s733_s27, %s621_s24  ;;  %p627_p13 = scmp.lt.s32.totalorder %s621_s24, %s621_s24 }
  0x1d   :  { %p628_p0 = por %p627_p13, %p626_p12 }
  0x1f   :  { %p629_p1 = pnand %p628_p0, %p622_p11 }
  0x21   :  { %632 = shalt.err (!%p629_p1)
}
  0x22   :  { %28 = dma.hbm_to_vmem [thread:$0]  %s840_s1, 1024, %s733_s27, [#allocation3], %s685_s13, %s685_s13, %s686_s14  }
  0x23   :  { %s687_s26 = smov [#allocation7]   ;;  %s633_s8 = scalar_lea.hbm %s844_s5, 1024 }
  0x24   :  { %s50_s28 = sshll.u32 %s687_s26, 4  ;;  %p634_p2 = scmp.ne.s32.totalorder %s844_s5, %s633_s8  ;;  %s51_s28 = int_to_ptr.vmem [resolvable:$true] %s50_s28 }
  0x25   :  { %p637_p3 = scmp.lt.u32.totalorder %s633_s8, %s844_s5 }
  0x27   :  { %p639_p4 = pnand %p637_p3, %p634_p2 }
  0x29   :  { %642 = shalt.err (!%p639_p4)
}
  0x2a   :  { %s643_s15 = scalar_lea.vmem %s51_s28, 1024  ;;  %p648_p6 = scmp.lt.s32.totalorder %s51_s28, %s51_s28 }
  0x2b   :  { %p644_p5 = scmp.ne.s32.totalorder %s51_s28, %s643_s15  ;;  %p649_p7 = scmp.lt.s32.totalorder %s643_s15, %s643_s15 }
  0x2d   :  { %p650_p8 = por %p649_p7, %p648_p6 }
  0x2f   :  { %p651_p9 = pnand %p650_p8, %p644_p5 }
  0x31   :  { %654 = shalt.err (!%p651_p9)
}
  0x32   :  { %56 = dma.hbm_to_vmem [thread:$0]  %s844_s5, 1024, %s51_s28, [#allocation6], %s685_s13, %s685_s13, %s686_s14  }
  0x33   :  { %677 = dma.done.wait [#allocation3], 1024  }
  0x34   :  { %678 = vsyncadd [#allocation3], 4294966272 }
  0x35   :  { %679 = dma.done.wait [#allocation6], 2048  }
  0x36   :  { %680 = vsyncadd [#allocation6], 4294965248  ;;  %v688_v0 = vmov 0.0   ;;  %vm689_vm0 = vmmov 0   ;;  %v564_v1 = vld [vmem:[#allocation2] sm:$0xff]   ;;  %v565_v2 = vld [vmem:[#allocation2 + $0x8] sm:$0xff]  }
  0x37   :  { %494 = vmatprep.subr.bf16.mxu0 %v688_v0  ;;  %510 = vmatprep.mubr.msk.bf16.mxu0 %vm689_vm0, %v688_v0  ;;  %v566_v3 = vld [vmem:[#allocation2 + $0x10] sm:$0xff]   ;;  %v573_v4 = vld [vmem:[#allocation5] sm:$0xff]   ;;  %v567_v5 = vld [vmem:[#allocation2 + $0x18] sm:$0xff]   ;;  %s690_s19 = smov [#allocation8]  }
  0x38   :  { %514 = vmatprep.subr.bf16.mxu1 %v688_v0  ;;  %530 = vmatprep.mubr.msk.bf16.mxu1 %vm689_vm0, %v688_v0  ;;  %v574_v6 = vld [vmem:[#allocation5 + $0x8] sm:$0xff]   ;;  %v568_v7 = vld [vmem:[#allocation2 + $0x20] sm:$0xff]   ;;  %v575_v8 = vld [vmem:[#allocation5 + $0x10] sm:$0xff]   ;;  %s426_s20 = sshll.u32 %s690_s19, 4  ;;  %s427_s20 = int_to_ptr.vmem [resolvable:$true] %s426_s20 }
  0x39   :  { %495 = vmatpush3.bf16.msra.mxu0 %v564_v1  ;;  %515 = vmatpush3.bf16.msra.mxu1 %v573_v4  ;;  %v569_v9 = vld [vmem:[#allocation2 + $0x28] sm:$0xff]   ;;  %v576_v10 = vld [vmem:[#allocation5 + $0x18] sm:$0xff]   ;;  %v570_v11 = vld [vmem:[#allocation2 + $0x30] sm:$0xff]   ;;  %p660_p11 = scmp.lt.s32.totalorder %s427_s20, %s427_s20 }
  0x3a   :  { %496 = vmatprep.subr.bf16.mxu0 %v688_v0  ;;  %516 = vmatprep.subr.bf16.mxu1 %v688_v0  ;;  %v577_v12 = vld [vmem:[#allocation5 + $0x20] sm:$0xff]   ;;  %v571_v13 = vld [vmem:[#allocation2 + $0x38] sm:$0xff]   ;;  %v578_v14 = vld [vmem:[#allocation5 + $0x28] sm:$0xff]  }
  0x3b   :  { %v572_v15 = vld [vmem:[%s839_s0] sm:$0xff]   ;;  %v579_v16 = vld [vmem:[#allocation5 + $0x30] sm:$0xff]   ;;  %v580_v17 = vld [vmem:[#allocation5 + $0x38] sm:$0xff]  }
  0x3c   :  { %v581_v18 = vld [vmem:[#allocation7] sm:$0xff]   ;;  %v582_v19 = vld [vmem:[#allocation7 + $0x8] sm:$0xff]   ;;  %v583_v20 = vld [vmem:[#allocation7 + $0x10] sm:$0xff]  }
  0x3d   :  { %497 = vmatpush3.bf16.msra.mxu0 %v565_v2  ;;  %517 = vmatpush3.bf16.msra.mxu1 %v574_v6  ;;  %v584_v21 = vld [vmem:[#allocation7 + $0x18] sm:$0xff]   ;;  %v585_v22 = vld [vmem:[#allocation7 + $0x20] sm:$0xff]   ;;  %v586_v23 = vld [vmem:[#allocation7 + $0x28] sm:$0xff]  }
  0x3e   :  { %498 = vmatprep.subr.bf16.mxu0 %v688_v0  ;;  %518 = vmatprep.subr.bf16.mxu1 %v688_v0  ;;  %v439_v24 = vld [vmem:[%s841_s2] ss:$0 sm:$0xff]  ;;  %v587_v34 = vld [vmem:[#allocation7 + $0x30] sm:$0xff]   ;;  %v588_v35 = vld [vmem:[#allocation7 + $0x38] sm:$0xff]  }
  0x3f   :  { %v449_v36 = vld [vmem:[%s843_s4] ss:$0 sm:$0xff]  ;;  %s655_s4 = scalar_lea.vmem %s427_s20, 256 }
  0x40   :  { %v458_v46 = vld [vmem:[%s845_s6] ss:$0 sm:$0xff]  ;;  %p656_p10 = scmp.ne.s32.totalorder %s427_s20, %s655_s4  ;;  %p661_p12 = scmp.lt.s32.totalorder %s655_s4, %s655_s4 }
  0x41   :  { %499 = vmatpush3.bf16.msra.mxu0 %v566_v3  ;;  %519 = vmatpush3.bf16.msra.mxu1 %v575_v8 }
  0x42   :  { %500 = vmatprep.subr.bf16.mxu0 %v688_v0  ;;  %520 = vmatprep.subr.bf16.mxu1 %v688_v0  ;;  %p662_p13 = por %p661_p12, %p660_p11 }
  0x44   :  { %p663_p0 = pnand %p662_p13, %p656_p10 }
  0x45   :  { %501 = vmatpush3.bf16.msra.mxu0 %v567_v5  ;;  %521 = vmatpush3.bf16.msra.mxu1 %v576_v10 }
  0x46   :  { %502 = vmatprep.subr.bf16.mxu0 %v688_v0  ;;  %522 = vmatprep.subr.bf16.mxu1 %v688_v0 }
  0x49   :  { %503 = vmatpush3.bf16.msra.mxu0 %v568_v7  ;;  %523 = vmatpush3.bf16.msra.mxu1 %v577_v12 }
  0x4a   :  { %504 = vmatprep.subr.bf16.mxu0 %v688_v0  ;;  %524 = vmatprep.subr.bf16.mxu1 %v688_v0 }
  0x4d   :  { %505 = vmatpush3.bf16.msra.mxu0 %v569_v9  ;;  %525 = vmatpush3.bf16.msra.mxu1 %v578_v14 }
  0x4e   :  { %506 = vmatprep.subr.bf16.mxu0 %v688_v0  ;;  %526 = vmatprep.subr.bf16.mxu1 %v688_v0 }
  0x51   :  { %507 = vmatpush3.bf16.msra.mxu0 %v570_v11  ;;  %527 = vmatpush3.bf16.msra.mxu1 %v579_v16 }
  0x52   :  { %508 = vmatprep.subr.bf16.mxu0 %v688_v0  ;;  %528 = vmatprep.subr.bf16.mxu1 %v688_v0 }
  0x55   :  { %509 = vmatpush3.bf16.msra.mxu0 %v571_v13  ;;  %529 = vmatpush3.bf16.msra.mxu1 %v580_v17 }
  0x56   :  { %534 = vmatprep.subr.bf16.mxu0 %v688_v0 }
  0x58   :  { %511 = vmatmul.mubr.bf16.vlgmr.msra.gmra.mrb[0].mxu0 %v572_v15 }
  0x59   :  { %550 = vmatprep.mubr.msk.bf16.mxu0 %vm689_vm0, %v688_v0  ;;  %535 = vmatpush3.bf16.msra.mxu0 %v581_v18 }
  0x5a   :  { %536 = vmatprep.subr.bf16.mxu0 %v688_v0 }
  0x5d   :  { %537 = vmatpush3.bf16.msra.mxu0 %v582_v19 }
  0x5e   :  { %538 = vmatprep.subr.bf16.mxu0 %v688_v0 }
  0x61   :  { %539 = vmatpush3.bf16.msra.mxu0 %v583_v20 }
  0x62   :  { %540 = vmatprep.subr.bf16.mxu0 %v688_v0 }
  0x65   :  { %541 = vmatpush3.bf16.msra.mxu0 %v584_v21 }
  0x66   :  { %542 = vmatprep.subr.bf16.mxu0 %v688_v0 }
  0x69   :  { %543 = vmatpush3.bf16.msra.mxu0 %v585_v22 }
  0x6a   :  { %544 = vmatprep.subr.bf16.mxu0 %v688_v0 }
  0x6d   :  { %545 = vmatpush3.bf16.msra.mxu0 %v586_v23 }
  0x6e   :  { %546 = vmatprep.subr.bf16.mxu0 %v688_v0 }
  0x71   :  { %547 = vmatpush3.bf16.msra.mxu0 %v587_v34 }
  0x72   :  { %548 = vmatprep.subr.bf16.mxu0 %v688_v0 }
  0x75   :  { %549 = vmatpush3.bf16.msra.mxu0 %v588_v35 }
 0x12b   :  { %v182_v25 = vpop.f32.mrb[0].mxu0 }
 0x12c   :  { %v183_v26 = vadd.f32 %v439_v24, %v182_v25  ;;  %v512_v27 = vpop.f32.mrb[1].mxu0 }
 0x12d   :  { %v185_v28 = vpop.f32.mrb[2].mxu0 }
 0x12e   :  { %v186_v29 = vadd.f32 %v439_v24, %v185_v28  ;;  %v513_v30 = vpop.f32.mrb[3].mxu0  ;;  %v189_v31 = vmax.f32 %v183_v26, 0.0 }
 0x130   :  { %v190_v32 = vmax.f32 %v186_v29, 0.0 }
 0x132   :  { %v191_v33 = vpack.c.bf16 %v190_v32, %v189_v31 }
 0x134   :  { %531 = vmatmul.mubr.bf16.vlgmr.msra.gmra.mrb[0].mxu1 %v191_v33 }
 0x207   :  { %v297_v37 = vpop.f32.mrb[0].mxu1 }
 0x208   :  { %v298_v38 = vadd.f32 %v449_v36, %v297_v37  ;;  %v532_v39 = vpop.f32.mrb[1].mxu1 }
 0x209   :  { %v300_v40 = vpop.f32.mrb[2].mxu1 }
 0x20a   :  { %v301_v41 = vadd.f32 %v449_v36, %v300_v40  ;;  %v533_v42 = vpop.f32.mrb[3].mxu1  ;;  %v304_v43 = vmax.f32 %v298_v38, 0.0 }
 0x20c   :  { %v305_v44 = vmax.f32 %v301_v41, 0.0 }
 0x20e   :  { %v306_v45 = vpack.c.bf16 %v305_v44, %v304_v43 }
 0x210   :  { %551 = vmatmul.mubr.bf16.vlgmr.msra.gmra.mrb[4].mxu0 %v306_v45 }
 0x2e3   :  { %v412_v47 = vpop.f32.mrb[4].mxu0 }
 0x2e4   :  { %v413_v48 = vadd.f32 %v458_v46, %v412_v47  ;;  %v552_v49 = vpop.f32.mrb[5].mxu0 }
 0x2e5   :  { %v415_v50 = vpop.f32.mrb[6].mxu0 }
 0x2e6   :  { %419 = vst [vmem:[#allocation8] sm:$0xff] %v413_v48  ;;  %v416_v51 = vadd.f32 %v458_v46, %v415_v50  ;;  %v553_v52 = vpop.f32.mrb[7].mxu0 }
 0x2e8   :  { %420 = vst [vmem:[#allocation8 + $0x8] sm:$0xff] %v416_v51 }
 0x2e9   :  { %666 = shalt.err (!%p663_p0)
}
 0x2ea   :  { %s667_s22 = scalar_lea.hbm %s846_s7, 256 }
 0x2eb   :  { %p668_p1 = scmp.ne.s32.totalorder %s846_s7, %s667_s22  ;;  %p671_p2 = scmp.lt.u32.totalorder %s667_s22, %s846_s7 }
 0x2ed   :  { %p673_p3 = pnand %p671_p2, %p668_p1 }
 0x2ef   :  { %676 = shalt.err (!%p673_p3)
}
 0x2f0   :  { %s691_s26 = smov 128   ;;  %s692_s28 = smov 8  }
 0x2f1   :  { %432 = dma.vmem_to_hbm [thread:$0]  %s427_s20, 256, %s846_s7, [#allocation4], %s691_s26, %s691_s26, %s692_s28  }
 0x2f2   :  { %681 = dma.done.wait [#allocation4], 256  }
 0x2f3   :  { %682 = vsyncadd [#allocation4], 4294967040 }
 0x2f4   :  { %436 = vsyncpa [#allocation3], 1 }
 0x2f5   :  { %437 = vsyncpa [#allocation6], 1 }
 0x2f6   :  { %438 = vsyncpa [#allocation4], 1 }

</bundles_post_ra>
